<compile_context>
chip_gen: v7x
topology: tpu7x:2x2x1
jax: 0.10.0
libtpu: 0.0.40
codegen_flags: <defaults>
</compile_context>

<pallas_src>
import numpy as np
import jax
import jax.numpy as jnp
from jax.experimental import pallas as pl
from jax.experimental.pallas import tpu as pltpu


def _cdiv(a, b):
    return -(-a // b)


def _round_up(x, m):
    return ((x + m - 1) // m) * m


def _linear2d_kernel(theta_ref, y_ref, out_ref):
    # theta_ref: SMEM (12, 2) f32 packed parameter table
    # y_ref:     VMEM (BR, 128) f32, lanes interleaved [y0, y1, y0, y1, ...]
    # out_ref:   VMEM (BR, 128) f32, same interleaved layout
    x = y_ref[...]                                        # (BR, 128)

    lane = jax.lax.broadcasted_iota(jnp.int32, (1, 128), 1)
    is_even = (lane & 1) == 0                             # True -> y0 / channel 0

    # Deinterleave: every lane gets the (y0, y1) of its own point.  Static
    # lane rotations (pairs never straddle a 128-lane row since 128 is even;
    # wrapped values are never selected).
    x_prev = jnp.roll(x, 1, axis=1)                       # lane i <- x[i-1]
    x_next = jnp.roll(x, -1, axis=1)                      # lane i <- x[i+1]
    y0 = jnp.where(is_even, x, x_prev)                    # (BR, 128)
    y1 = jnp.where(is_even, x_next, x)                    # (BR, 128)

    e0 = jnp.exp(jnp.minimum(y0, 4.0))                    # exp(clamp(y0, max=4)) (EUP)
    e1 = jnp.exp(jnp.minimum(y1, 4.0))
    y11 = y1 * y1

    # Parity-selected coefficient rows, (1,128) each, built once per tile from
    # the tiny SMEM theta table (even lanes use channel-0 thetas, odd lanes
    # channel-1 thetas).
    def coef(k):
        return jnp.where(is_even, theta_ref[k, 0], theta_ref[k, 1])

    # Horner in y0:  out = c0 + y0*(c1 + y0*(c2 + y0*c3))
    c3 = coef(6)                                           # theta3[0]            * y0^3
    c2 = coef(3) + y1 * coef(7)                            # theta2[0] + theta3[1]*y1
    c1 = coef(1) + y1 * coef(4) + y11 * coef(8)            # theta1[0] + theta2[1]*y1 + theta3[2]*y1^2
    c0 = (coef(0) + y1 * coef(2) + y11 * (coef(5) + y1 * coef(9))
          + e0 * coef(10) + e1 * coef(11))                 # theta0 + theta1[1]*y1 + theta2[2]*y1^2
                                                           # + theta3[3]*y1^3 + exp terms

    out_ref[...] = c0 + y0 * (c1 + y0 * (c2 + y0 * c3))


def linear2d_forward(t, y, theta0, theta1, theta2, theta3, theta_exp, *,
                     block_rows=2048):
    """Pallas equivalent of Linear2D_system.forward(t, y).  y: (..., 2)."""
    del t  # unused in the reference module as well
    theta_all = jnp.concatenate(
        [theta0, theta1, theta2, theta3, theta_exp], axis=0
    ).astype(jnp.float32)                                  # (12, 2)

    orig_shape = y.shape
    if orig_shape[-1] != 2:
        raise ValueError("Linear2D_system expects y[..., 2]")

    yf = jnp.asarray(y, jnp.float32).reshape(-1)           # interleaved y0,y1,... (free reshape)
    L = int(yf.shape[0])

    rows = _cdiv(L, 128)
    if rows <= 8:
        num_blocks, br = 1, rows                           # single full-array block
    else:
        # >=2 balanced blocks (megacore), block rows a multiple of 8, capped
        # near block_rows so per-step overhead is amortized.
        num_blocks = _round_up(max(2, _cdiv(rows, block_rows)), 2)
        br = _round_up(_cdiv(rows, num_blocks), 8)
    padded_rows = num_blocks * br

    pad = padded_rows * 128 - L
    if pad:
        yf = jnp.pad(yf, (0, pad))                         # single small 1-D pad (often a no-op)
    y2 = yf.reshape(padded_rows, 128)                      # lane-dense slabs

    out = pl.pallas_call(
        _linear2d_kernel,
        out_shape=jax.ShapeDtypeStruct((padded_rows, 128), jnp.float32),
        grid=(num_blocks,),
        in_specs=[
            pl.BlockSpec(memory_space=pltpu.MemorySpace.SMEM),  # theta table, whole, SMEM
            pl.BlockSpec((br, 128), lambda i: (i, 0)),          # y tile
        ],
        out_specs=pl.BlockSpec((br, 128), lambda i: (i, 0)),
        compiler_params=pltpu.CompilerParams(
            dimension_semantics=("parallel",)
        ),
    )(theta_all, y2)

    out_flat = out.reshape(-1)
    if pad:
        out_flat = out_flat[:L]
    return out_flat.reshape(orig_shape)


def reference_forward(t, y, theta0, theta1, theta2, theta3, theta_exp):
    """Pure-JAX mirror of the PyTorch forward, for verification."""
    del t
    out = y @ theta1 + theta0
    y0 = y[..., 0]
    y1 = y[..., 1]
    out = out + (y0 * y0)[..., None] * theta2[0:1, :] \
              + (y0 * y1)[..., None] * theta2[1:2, :] \
              + (y1 * y1)[..., None] * theta2[2:, :]
    out = out + (y0 ** 3)[..., None] * theta3[0:1, :] \
              + (y0 ** 2 * y1)[..., None] * theta3[1:2, :] \
              + (y0 * y1 ** 2)[..., None] * theta3[2:3, :] \
              + (y1 ** 3)[..., None] * theta3[3:, :]
    out = out + jnp.exp(jnp.minimum(y, 4.0)) @ theta_exp
    return out


if __name__ == "__main__":
    key = jax.random.PRNGKey(0)
    k0, k1, k2, k3, k4, ky = jax.random.split(key, 6)

    # Parameters per Linear2D_system.__init__ (theta2/theta3/theta_exp are rand*0).
    theta0 = jax.random.uniform(k0, (1, 2), jnp.float32)
    theta1 = jax.random.uniform(k1, (2, 2), jnp.float32)
    theta2 = jax.random.uniform(k2, (3, 2), jnp.float32) * 0.0
    theta3 = jax.random.uniform(k3, (4, 2), jnp.float32) * 0.0
    theta_exp = jax.random.uniform(k4, (2, 2), jnp.float32) * 0.0

    # Input: batch=2, seq=64 state points of dimension 2  ->  y: (2, 64, 2)
    y = jax.random.normal(ky, (2, 64, 2), jnp.float32)
    t = jnp.float32(0.0)

    out = jax.block_until_ready(
        linear2d_forward(t, y, theta0, theta1, theta2, theta3, theta_exp))
    ref = reference_forward(t, y, theta0, theta1, theta2, theta3, theta_exp)
    assert out.shape == ref.shape == y.shape
    np.testing.assert_allclose(np.asarray(out), np.asarray(ref), rtol=1e-5, atol=1e-4)

    # Non-zero theta2/theta3/theta_exp so the quadratic, cubic and exp branches
    # of the kernel are actually exercised.
    kk2, kk3, kk4, ky2 = jax.random.split(jax.random.PRNGKey(1), 4)
    theta2_nz = jax.random.uniform(kk2, (3, 2), jnp.float32)
    theta3_nz = jax.random.uniform(kk3, (4, 2), jnp.float32)
    theta_exp_nz = jax.random.uniform(kk4, (2, 2), jnp.float32)

    out_nz = jax.block_until_ready(
        linear2d_forward(t, y, theta0, theta1, theta2_nz, theta3_nz, theta_exp_nz))
    ref_nz = reference_forward(t, y, theta0, theta1, theta2_nz, theta3_nz, theta_exp_nz)
    np.testing.assert_allclose(np.asarray(out_nz), np.asarray(ref_nz),
                               rtol=1e-5, atol=1e-4)

    # A non-aligned shape to exercise the multi-block grid + padded tail path.
    y_big = jax.random.normal(ky2, (3, 500, 2), jnp.float32)
    out_big = jax.block_until_ready(
        linear2d_forward(t, y_big, theta0, theta1, theta2_nz, theta3_nz, theta_exp_nz))
    ref_big = reference_forward(t, y_big, theta0, theta1, theta2_nz, theta3_nz, theta_exp_nz)
    np.testing.assert_allclose(np.asarray(out_big), np.asarray(ref_big),
                               rtol=1e-5, atol=1e-4)

    print("KERNEL_OK")
</pallas_src>

<mosaic_0001>
module attributes {stable_mosaic.version = 11 : i64} {
  func.func @_linear2d_kernel(%arg0: i32, %arg1: memref<12x2xf32, #tpu.memory_space<smem>>, %arg2: memref<2x128xf32, #tpu.memory_space<vmem>>, %arg3: memref<2x128xf32, #tpu.memory_space<vmem>>) attributes {dimension_semantics = [#tpu.dimension_semantics<parallel>], iteration_bounds = array<i64: 1>, scalar_prefetch = 0 : i64, scratch_operands = 0 : i64, tpu.core_type = #tpu.core_type<tc>, window_params = [{transform_indices = @transform_0, window_bounds = array<i64: 12, 2>}, {transform_indices = @transform_1, window_bounds = array<i64: 2, 128>}, {transform_indices = @transform_2, window_bounds = array<i64: 2, 128>}]} {
    %c0 = arith.constant 0 : index
    %c0_0 = arith.constant 0 : index
    %0 = vector.load %arg2[%c0, %c0_0] : memref<2x128xf32, #tpu.memory_space<vmem>>, vector<2x128xf32>
    %1 = tpu.iota {dimensions = array<i32: 1>} : vector<1x128xi32>
    %c1_i32 = arith.constant 1 : i32
    %2 = vector.broadcast %c1_i32 : i32 to vector<1x128xi32>
    %3 = arith.andi %1, %2 : vector<1x128xi32>
    %c0_i32 = arith.constant 0 : i32
    %4 = vector.broadcast %c0_i32 : i32 to vector<1x128xi32>
    %5 = arith.cmpi eq, %3, %4 : vector<1x128xi32>
    %6 = vector.extract_strided_slice %0 {offsets = [0, 127], sizes = [2, 1], strides = [1, 1]} : vector<2x128xf32> to vector<2x1xf32>
    %7 = vector.extract_strided_slice %0 {offsets = [0, 0], sizes = [2, 127], strides = [1, 1]} : vector<2x128xf32> to vector<2x127xf32>
    %8 = tpu.concatenate %6, %7 in 1 : vector<2x1xf32>, vector<2x127xf32> -> vector<2x128xf32>
    %9 = vector.extract_strided_slice %0 {offsets = [0, 1], sizes = [2, 127], strides = [1, 1]} : vector<2x128xf32> to vector<2x127xf32>
    %10 = vector.extract_strided_slice %0 {offsets = [0, 0], sizes = [2, 1], strides = [1, 1]} : vector<2x128xf32> to vector<2x1xf32>
    %11 = tpu.concatenate %9, %10 in 1 : vector<2x127xf32>, vector<2x1xf32> -> vector<2x128xf32>
    %12 = vector.shape_cast %5 : vector<1x128xi1> to vector<1x128xi1>
    %13 = vector.broadcast %12 : vector<1x128xi1> to vector<2x128xi1>
    %14 = arith.select %13, %0, %8 : vector<2x128xi1>, vector<2x128xf32>
    %15 = vector.shape_cast %5 : vector<1x128xi1> to vector<1x128xi1>
    %16 = vector.broadcast %15 : vector<1x128xi1> to vector<2x128xi1>
    %17 = arith.select %16, %11, %0 : vector<2x128xi1>, vector<2x128xf32>
    %cst = arith.constant 4.000000e+00 : f32
    %18 = vector.broadcast %cst : f32 to vector<2x128xf32>
    %19 = arith.minimumf %14, %18 : vector<2x128xf32>
    %20 = math.exp %19 : vector<2x128xf32>
    %cst_1 = arith.constant 4.000000e+00 : f32
    %21 = vector.broadcast %cst_1 : f32 to vector<2x128xf32>
    %22 = arith.minimumf %17, %21 : vector<2x128xf32>
    %23 = math.exp %22 : vector<2x128xf32>
    %24 = arith.mulf %17, %17 : vector<2x128xf32>
    %c6 = arith.constant 6 : index
    %c0_2 = arith.constant 0 : index
    %25 = memref.load %arg1[%c6, %c0_2] : memref<12x2xf32, #tpu.memory_space<smem>>
    %c6_3 = arith.constant 6 : index
    %c1 = arith.constant 1 : index
    %26 = memref.load %arg1[%c6_3, %c1] : memref<12x2xf32, #tpu.memory_space<smem>>
    %27 = vector.broadcast %25 : f32 to vector<1x128xf32>
    %28 = vector.broadcast %26 : f32 to vector<1x128xf32>
    %29 = arith.select %5, %27, %28 : vector<1x128xi1>, vector<1x128xf32>
    %c3 = arith.constant 3 : index
    %c0_4 = arith.constant 0 : index
    %30 = memref.load %arg1[%c3, %c0_4] : memref<12x2xf32, #tpu.memory_space<smem>>
    %c3_5 = arith.constant 3 : index
    %c1_6 = arith.constant 1 : index
    %31 = memref.load %arg1[%c3_5, %c1_6] : memref<12x2xf32, #tpu.memory_space<smem>>
    %32 = vector.broadcast %30 : f32 to vector<1x128xf32>
    %33 = vector.broadcast %31 : f32 to vector<1x128xf32>
    %34 = arith.select %5, %32, %33 : vector<1x128xi1>, vector<1x128xf32>
    %c7 = arith.constant 7 : index
    %c0_7 = arith.constant 0 : index
    %35 = memref.load %arg1[%c7, %c0_7] : memref<12x2xf32, #tpu.memory_space<smem>>
    %c7_8 = arith.constant 7 : index
    %c1_9 = arith.constant 1 : index
    %36 = memref.load %arg1[%c7_8, %c1_9] : memref<12x2xf32, #tpu.memory_space<smem>>
    %37 = vector.broadcast %35 : f32 to vector<1x128xf32>
    %38 = vector.broadcast %36 : f32 to vector<1x128xf32>
    %39 = arith.select %5, %37, %38 : vector<1x128xi1>, vector<1x128xf32>
    %40 = vector.broadcast %39 : vector<1x128xf32> to vector<2x128xf32>
    %41 = arith.mulf %17, %40 : vector<2x128xf32>
    %42 = vector.broadcast %34 : vector<1x128xf32> to vector<2x128xf32>
    %43 = arith.addf %42, %41 : vector<2x128xf32>
    %c1_10 = arith.constant 1 : index
    %c0_11 = arith.constant 0 : index
    %44 = memref.load %arg1[%c1_10, %c0_11] : memref<12x2xf32, #tpu.memory_space<smem>>
    %c1_12 = arith.constant 1 : index
    %c1_13 = arith.constant 1 : index
    %45 = memref.load %arg1[%c1_12, %c1_13] : memref<12x2xf32, #tpu.memory_space<smem>>
    %46 = vector.broadcast %44 : f32 to vector<1x128xf32>
    %47 = vector.broadcast %45 : f32 to vector<1x128xf32>
    %48 = arith.select %5, %46, %47 : vector<1x128xi1>, vector<1x128xf32>
    %c4 = arith.constant 4 : index
    %c0_14 = arith.constant 0 : index
    %49 = memref.load %arg1[%c4, %c0_14] : memref<12x2xf32, #tpu.memory_space<smem>>
    %c4_15 = arith.constant 4 : index
    %c1_16 = arith.constant 1 : index
    %50 = memref.load %arg1[%c4_15, %c1_16] : memref<12x2xf32, #tpu.memory_space<smem>>
    %51 = vector.broadcast %49 : f32 to vector<1x128xf32>
    %52 = vector.broadcast %50 : f32 to vector<1x128xf32>
    %53 = arith.select %5, %51, %52 : vector<1x128xi1>, vector<1x128xf32>
    %54 = vector.broadcast %53 : vector<1x128xf32> to vector<2x128xf32>
    %55 = arith.mulf %17, %54 : vector<2x128xf32>
    %56 = vector.broadcast %48 : vector<1x128xf32> to vector<2x128xf32>
    %57 = arith.addf %56, %55 : vector<2x128xf32>
    %c8 = arith.constant 8 : index
    %c0_17 = arith.constant 0 : index
    %58 = memref.load %arg1[%c8, %c0_17] : memref<12x2xf32, #tpu.memory_space<smem>>
    %c8_18 = arith.constant 8 : index
    %c1_19 = arith.constant 1 : index
    %59 = memref.load %arg1[%c8_18, %c1_19] : memref<12x2xf32, #tpu.memory_space<smem>>
    %60 = vector.broadcast %58 : f32 to vector<1x128xf32>
    %61 = vector.broadcast %59 : f32 to vector<1x128xf32>
    %62 = arith.select %5, %60, %61 : vector<1x128xi1>, vector<1x128xf32>
    %63 = vector.broadcast %62 : vector<1x128xf32> to vector<2x128xf32>
    %64 = arith.mulf %24, %63 : vector<2x128xf32>
    %65 = arith.addf %57, %64 : vector<2x128xf32>
    %c0_20 = arith.constant 0 : index
    %c0_21 = arith.constant 0 : index
    %66 = memref.load %arg1[%c0_20, %c0_21] : memref<12x2xf32, #tpu.memory_space<smem>>
    %c0_22 = arith.constant 0 : index
    %c1_23 = arith.constant 1 : index
    %67 = memref.load %arg1[%c0_22, %c1_23] : memref<12x2xf32, #tpu.memory_space<smem>>
    %68 = vector.broadcast %66 : f32 to vector<1x128xf32>
    %69 = vector.broadcast %67 : f32 to vector<1x128xf32>
    %70 = arith.select %5, %68, %69 : vector<1x128xi1>, vector<1x128xf32>
    %c2 = arith.constant 2 : index
    %c0_24 = arith.constant 0 : index
    %71 = memref.load %arg1[%c2, %c0_24] : memref<12x2xf32, #tpu.memory_space<smem>>
    %c2_25 = arith.constant 2 : index
    %c1_26 = arith.constant 1 : index
    %72 = memref.load %arg1[%c2_25, %c1_26] : memref<12x2xf32, #tpu.memory_space<smem>>
    %73 = vector.broadcast %71 : f32 to vector<1x128xf32>
    %74 = vector.broadcast %72 : f32 to vector<1x128xf32>
    %75 = arith.select %5, %73, %74 : vector<1x128xi1>, vector<1x128xf32>
    %76 = vector.broadcast %75 : vector<1x128xf32> to vector<2x128xf32>
    %77 = arith.mulf %17, %76 : vector<2x128xf32>
    %78 = vector.broadcast %70 : vector<1x128xf32> to vector<2x128xf32>
    %79 = arith.addf %78, %77 : vector<2x128xf32>
    %c5 = arith.constant 5 : index
    %c0_27 = arith.constant 0 : index
    %80 = memref.load %arg1[%c5, %c0_27] : memref<12x2xf32, #tpu.memory_space<smem>>
    %c5_28 = arith.constant 5 : index
    %c1_29 = arith.constant 1 : index
    %81 = memref.load %arg1[%c5_28, %c1_29] : memref<12x2xf32, #tpu.memory_space<smem>>
    %82 = vector.broadcast %80 : f32 to vector<1x128xf32>
    %83 = vector.broadcast %81 : f32 to vector<1x128xf32>
    %84 = arith.select %5, %82, %83 : vector<1x128xi1>, vector<1x128xf32>
    %c9 = arith.constant 9 : index
    %c0_30 = arith.constant 0 : index
    %85 = memref.load %arg1[%c9, %c0_30] : memref<12x2xf32, #tpu.memory_space<smem>>
    %c9_31 = arith.constant 9 : index
    %c1_32 = arith.constant 1 : index
    %86 = memref.load %arg1[%c9_31, %c1_32] : memref<12x2xf32, #tpu.memory_space<smem>>
    %87 = vector.broadcast %85 : f32 to vector<1x128xf32>
    %88 = vector.broadcast %86 : f32 to vector<1x128xf32>
    %89 = arith.select %5, %87, %88 : vector<1x128xi1>, vector<1x128xf32>
    %90 = vector.broadcast %89 : vector<1x128xf32> to vector<2x128xf32>
    %91 = arith.mulf %17, %90 : vector<2x128xf32>
    %92 = vector.broadcast %84 : vector<1x128xf32> to vector<2x128xf32>
    %93 = arith.addf %92, %91 : vector<2x128xf32>
    %94 = arith.mulf %24, %93 : vector<2x128xf32>
    %95 = arith.addf %79, %94 : vector<2x128xf32>
    %c10 = arith.constant 10 : index
    %c0_33 = arith.constant 0 : index
    %96 = memref.load %arg1[%c10, %c0_33] : memref<12x2xf32, #tpu.memory_space<smem>>
    %c10_34 = arith.constant 10 : index
    %c1_35 = arith.constant 1 : index
    %97 = memref.load %arg1[%c10_34, %c1_35] : memref<12x2xf32, #tpu.memory_space<smem>>
    %98 = vector.broadcast %96 : f32 to vector<1x128xf32>
    %99 = vector.broadcast %97 : f32 to vector<1x128xf32>
    %100 = arith.select %5, %98, %99 : vector<1x128xi1>, vector<1x128xf32>
    %101 = vector.broadcast %100 : vector<1x128xf32> to vector<2x128xf32>
    %102 = arith.mulf %20, %101 : vector<2x128xf32>
    %103 = arith.addf %95, %102 : vector<2x128xf32>
    %c11 = arith.constant 11 : index
    %c0_36 = arith.constant 0 : index
    %104 = memref.load %arg1[%c11, %c0_36] : memref<12x2xf32, #tpu.memory_space<smem>>
    %c11_37 = arith.constant 11 : index
    %c1_38 = arith.constant 1 : index
    %105 = memref.load %arg1[%c11_37, %c1_38] : memref<12x2xf32, #tpu.memory_space<smem>>
    %106 = vector.broadcast %104 : f32 to vector<1x128xf32>
    %107 = vector.broadcast %105 : f32 to vector<1x128xf32>
    %108 = arith.select %5, %106, %107 : vector<1x128xi1>, vector<1x128xf32>
    %109 = vector.broadcast %108 : vector<1x128xf32> to vector<2x128xf32>
    %110 = arith.mulf %23, %109 : vector<2x128xf32>
    %111 = arith.addf %103, %110 : vector<2x128xf32>
    %112 = vector.broadcast %29 : vector<1x128xf32> to vector<2x128xf32>
    %113 = arith.mulf %14, %112 : vector<2x128xf32>
    %114 = arith.addf %43, %113 : vector<2x128xf32>
    %115 = arith.mulf %14, %114 : vector<2x128xf32>
    %116 = arith.addf %65, %115 : vector<2x128xf32>
    %117 = arith.mulf %14, %116 : vector<2x128xf32>
    %118 = arith.addf %111, %117 : vector<2x128xf32>
    %c0_39 = arith.constant 0 : index
    %c0_40 = arith.constant 0 : index
    %119 = vector.load %arg3[%c0_39, %c0_40] : memref<2x128xf32, #tpu.memory_space<vmem>>, vector<2x128xf32>
    tpu.vector_store %arg3[%c0_39, %c0_40], %118 {strides = array<i32>} : memref<2x128xf32, #tpu.memory_space<vmem>>, vector<2x128xf32>,
    return
  }
  func.func @transform_0(%arg0: i32) -> (i32, i32) {
    %c0_i32 = arith.constant 0 : i32
    %c0_i32_0 = arith.constant 0 : i32
    %c0_i32_1 = arith.constant 0 : i32
    return %c0_i32, %c0_i32_0 : i32, i32
  }
  func.func @transform_1(%arg0: i32) -> (i32, i32) {
    %c0_i32 = arith.constant 0 : i32
    %c0_i32_0 = arith.constant 0 : i32
    return %arg0, %c0_i32 : i32, i32
  }
  func.func @transform_2(%arg0: i32) -> (i32, i32) {
    %c0_i32 = arith.constant 0 : i32
    %c0_i32_0 = arith.constant 0 : i32
    return %arg0, %c0_i32 : i32, i32
  }
}

</mosaic_0001>

<bundles_post_ra>
// kernel: tpu_custom_call.1
= control target key start
LH: loop header
LB: loop body
LE: loop exit
PB: predicated region body
PF: predicated region fallthrough
CT: control target
= control target key end

     0   :  { %7 = vsyncpa [#allocation4], 0  ;;  %s365_s0 = inlined_call_operand.vmem [shape: f32[12,2], index: 0, kind: input, shape index: {}]   ;;  %s366_s1 = inlined_call_operand.vmem [shape: f32[2,128], index: 1, kind: input, shape index: {}]   ;;  %s367_s2 = inlined_call_operand.hbm [shape: f32[2,128], index: 2, kind: output, shape index: {}]  }
   0x1   :  { %8 = vsyncpa [#allocation3], 0  ;;  %s14_s11 = sshll.u32 %s365_s0, 4  ;;  %s15_s11 = int_to_ptr.vmem [resolvable:$true] %s14_s11 }
   0x2   :  { %s181_s12 = scalar_lea.vmem %s15_s11, 256  ;;  %p186_p1 = scmp.lt.s32.totalorder %s15_s11, %s15_s11 }
   0x3   :  { %p182_p0 = scmp.ne.s32.totalorder %s15_s11, %s181_s12  ;;  %p187_p2 = scmp.lt.s32.totalorder %s181_s12, %s181_s12 }
   0x5   :  { %p188_p3 = por %p187_p2, %p186_p1 }
   0x7   :  { %p189_p4 = pnand %p188_p3, %p182_p0 }
   0x9   :  { %192 = shalt.err (!%p189_p4)
}
   0xa   :  { %s219_s13 = smov [#allocation2]   ;;  %s220_s14 = smov 128  }
   0xb   :  { %s221_s15 = smov 8  }
   0xc   :  { %20 = dma.vmem_to_smem %s15_s11, 256, %s219_s13, [#allocation4], %s220_s14, %s220_s14, %s221_s15  }
   0xd   :  { %215 = dma.done.wait [#allocation4], 256  }
   0xe   :  { %216 = vsyncadd [#allocation4], 4294967040 }
   0xf   :  { %26 = sfence }
  0x10   :  { %v27_v0 = vld [vmem:[%s366_s1] sm:$0x3]  ;;  %s222_s0 = smov 1   ;;  %s223_s18 = smov 127   ;;  %v28_v1 = vlaneseq }
  0x11   :  { %33 = vrot.lane.b32.xlu0 %v27_v0, %s222_s0  ;;  %s246_s19 = sld [smem:[#allocation2 + $0x300]]  ;;  %s248_s20 = sld [smem:[#allocation2 + $0x301]] }
  0x12   :  { %v29_v2 = vand.u32 127, %v28_v1  ;;  %s250_s21 = sld [smem:[#allocation2 + $0x380]]  ;;  %s252_s22 = sld [smem:[#allocation2 + $0x381]] }
  0x13   :  { %s254_s23 = sld [smem:[#allocation2 + $0x200]]  ;;  %s256_s1 = sld [smem:[#allocation2 + $0x201]] }
  0x14   :  { %s258_s24 = sld [smem:[#allocation2 + $0x480]]  ;;  %s260_s25 = sld [smem:[#allocation2 + $0x481]]  ;;  %v30_v3 = vand.u32 1, %v29_v2 }
  0x15   :  { %36 = vrot.lane.b32.xlu0 %v27_v0, %s223_s18  ;;  %s262_s26 = sld [smem:[#allocation2 + $0x180]]  ;;  %s264_s27 = sld [smem:[#allocation2 + $0x181]] }
  0x16   :  { %s266_s28 = sld [smem:[#allocation2 + $0x100]]  ;;  %s268_s29 = sld [smem:[#allocation2 + $0x101]]  ;;  %vm276_vm0 = vcmp.eq.s32.totalorder %v30_v3, 0 }
  0x17   :  { %s270_s30 = sld [smem:[#allocation2 + $0x80]]  ;;  %s274_s4 = sld [smem:[#allocation2 + $0x281]]  ;;  %v52_v5 = vstv %s246_s19  ;;  %v53_v6 = vstv %s248_s20 }
  0x18   :  { %s272_s3 = sld [smem:[#allocation2 + $0x280]]  ;;  %s280_s5 = sld [smem:[#allocation2 + $0x81]]  ;;  %v62_v7 = vstv %s250_s21  ;;  %v63_v9 = vstv %s252_s22  ;;  %v54_v18 = vsel %vm276_vm0, %v52_v5, %v53_v6 }
  0x19   :  { %s285_s6 = sld [smem:[#allocation2 + $0x400]]  ;;  %s287_s7 = sld [smem:[#allocation2 + $0x401]]  ;;  %v74_v10 = vstv %s254_s23  ;;  %v75_v11 = vstv %s256_s1  ;;  %v64_v19 = vsel %vm276_vm0, %v62_v7, %v63_v9 }
  0x1a   :  { %v105_v12 = vstv %s258_s24  ;;  %v106_v14 = vstv %s260_s25  ;;  %s301_s8 = sld [smem:[#allocation2]]  ;;  %s303_s9 = sld [smem:[#allocation2 + $0x1]]  ;;  %v76_v20 = vsel %vm276_vm0, %v74_v10, %v75_v11 }
  0x1b   :  { %v57_v15 = vstv %s262_s26  ;;  %v58_v16 = vstv %s264_s27  ;;  %s312_s10 = sld [smem:[#allocation2 + $0x500]]  ;;  %s314_s11 = sld [smem:[#allocation2 + $0x501]]  ;;  %v107_v24 = vsel %vm276_vm0, %v105_v12, %v106_v14 }
  0x1c   :  { %v93_v21 = vstv %s266_s28  ;;  %v94_v23 = vstv %s268_s29  ;;  %v59_v26 = vsel %vm276_vm0, %v57_v15, %v58_v16  ;;  %s329_s12 = sld [smem:[#allocation2 + $0x580]]  ;;  %s170_s13 = sld [smem:[#allocation2 + $0x581]] }
  0x1d   :  { %v69_v28 = vstv %s270_s30  ;;  %v101_v30 = vstv %s274_s4  ;;  %v95_v37 = vsel %vm276_vm0, %v93_v21, %v94_v23  ;;  %s224_s14 = smov [#allocation5]  }
  0x1e   :  { %v100_v29 = vstv %s272_s3  ;;  %v70_v33 = vstv %s280_s5  ;;  %s139_s15 = sshll.u32 %s224_s14, 4  ;;  %s140_s15 = int_to_ptr.vmem [resolvable:$true] %s139_s15 }
  0x1f   :  { %v81_v35 = vstv %s285_s6  ;;  %v82_v36 = vstv %s287_s7  ;;  %v102_v40 = vsel %vm276_vm0, %v100_v29, %v101_v30  ;;  %v71_v44 = vsel %vm276_vm0, %v69_v28, %v70_v33  ;;  %s193_s16 = scalar_lea.vmem %s140_s15, 32  ;;  %p198_p6 = scmp.lt.s32.totalorder %s140_s15, %s140_s15 }
  0x20   :  { %v83_v45 = vsel %vm276_vm0, %v81_v35, %v82_v36  ;;  %v88_v46 = vstv %s301_s8  ;;  %v89_v47 = vstv %s303_s9  ;;  %p194_p5 = scmp.ne.s32.totalorder %s140_s15, %s193_s16  ;;  %p199_p7 = scmp.lt.s32.totalorder %s193_s16, %s193_s16 }
  0x21   :  { %v114_v49 = vstv %s312_s10  ;;  %v115_v50 = vstv %s314_s11  ;;  %v90_v55 = vsel %vm276_vm0, %v88_v46, %v89_v47 }
  0x22   :  { %v116_v56 = vsel %vm276_vm0, %v114_v49, %v115_v50  ;;  %v121_v58 = vstv %s329_s12  ;;  %v122_v59 = vstv %s170_s13  ;;  %p200_p8 = por %p199_p7, %p198_p6 }
  0x23   :  { %v123_v1 = vsel %vm276_vm0, %v121_v58, %v122_v59 }
  0x24   :  { %p201_p9 = pnand %p200_p8, %p194_p5 }
  0x83   :  { %v34_v8 = vpop.permute.xlu0 %33 }
  0x84   :  { %v295_v13 = vsel %vm276_vm0, %v27_v0, %v34_v8 }
  0x85   :  { %v43_v17 = vmin.f32 %v295_v13, 4.0  ;;  %v126_v41 = vmul.f32 %v54_v18, %v295_v13 }
  0x87   :  { %v44_v22 = vmul.f32 1.442695, %v43_v17  ;;  %v37_v25 = vpop.permute.xlu0 %36 }
  0x88   :  { %v42_v27 = vsel %vm276_vm0, %v37_v25, %v27_v0 }
  0x89   :  { %177 = vpow2.f32 %v44_v22  ;;  %v46_v31 = vmin.f32 %v42_v27, 4.0  ;;  %v65_v32 = vmul.f32 %v64_v19, %v42_v27  ;;  %v108_v34 = vmul.f32 %v107_v24, %v42_v27 }
  0x8a   :  { %v49_v42 = vmul.f32 %v42_v27, %v42_v27  ;;  %v77_v43 = vmul.f32 %v76_v20, %v42_v27  ;;  %v96_v52 = vmul.f32 %v95_v37, %v42_v27 }
  0x8b   :  { %v47_v38 = vmul.f32 1.442695, %v46_v31  ;;  %v66_v39 = vadd.f32 %v65_v32, %v59_v26  ;;  %v109_v48 = vadd.f32 %v108_v34, %v102_v40 }
  0x8c   :  { %v78_v53 = vadd.f32 %v77_v43, %v71_v44  ;;  %v84_v54 = vmul.f32 %v83_v45, %v49_v42  ;;  %v97_v63 = vadd.f32 %v96_v52, %v90_v55 }
  0x8d   :  { %179 = vpow2.f32 %v47_v38  ;;  %v127_v51 = vadd.f32 %v126_v41, %v66_v39  ;;  %v110_v57 = vmul.f32 %v109_v48, %v49_v42 }
  0x8e   :  { %v85_v62 = vadd.f32 %v84_v54, %v78_v53 }
  0x8f   :  { %v128_v60 = vmul.f32 %v127_v51, %v295_v13  ;;  %v111_v2 = vadd.f32 %v110_v57, %v97_v63 }
  0x91   :  { %v129_v3 = vadd.f32 %v128_v60, %v85_v62 }
  0x93   :  { %v178_v61 = vpop.eup %177  ;;  %v130_v9 = vmul.f32 %v129_v3, %v295_v13 }
  0x94   :  { %v117_v0 = vmul.f32 %v178_v61, %v116_v56 }
  0x96   :  { %v118_v6 = vadd.f32 %v117_v0, %v111_v2 }
  0x97   :  { %v180_v5 = vpop.eup %179 }
  0x98   :  { %v124_v7 = vmul.f32 %v180_v5, %v123_v1 }
  0x9a   :  { %v125_v8 = vadd.f32 %v124_v7, %v118_v6 }
  0x9c   :  { %v131_v10 = vadd.f32 %v130_v9, %v125_v8 }
  0x9e   :  { %132 = vst [vmem:[#allocation5] sm:$0x3] %v131_v10 }
  0x9f   :  { %204 = shalt.err (!%p201_p9)
}
  0xa0   :  { %s205_s18 = scalar_lea.hbm %s367_s2, 32 }
  0xa1   :  { %p206_p10 = scmp.ne.s32.totalorder %s367_s2, %s205_s18  ;;  %p209_p11 = scmp.lt.u32.totalorder %s205_s18, %s367_s2 }
  0xa3   :  { %p211_p12 = pnand %p209_p11, %p206_p10 }
  0xa5   :  { %214 = shalt.err (!%p211_p12)
}
  0xa6   :  { %142 = dma.vmem_to_hbm [thread:$0]  %s140_s15, 32, %s367_s2, [#allocation3]  }
  0xa7   :  { %217 = dma.done.wait [#allocation3], 32  }
  0xa8   :  { %218 = vsyncadd [#allocation3], 4294967264 }
  0xa9   :  { %146 = vsyncpa [#allocation3], 1 }
  0xaa   :  { %147 = vsyncpa [#allocation4], 1 }

</bundles_post_ra>
